<compile_context>
chip_gen: v7x
topology: tpu7x:2x2x1
jax: 0.10.0
libtpu: 0.0.40
codegen_flags: <defaults>
</compile_context>

<pallas_src>
import functools

import jax
import jax.numpy as jnp
from jax.experimental import pallas as pl
from jax.experimental.pallas import tpu as pltpu


# ----------------------------------------------------------------------------
# Fused kernel: conv(im2col matmul, bf16 in / f32 acc) + BN bias + ReLU + 3x3/s2 pool
#   patches: (M, Kp) bf16, rows ordered (img, oh, ow%2, ow//2), Kp = pad(7*7*Cin, 16)
#   weight : (Kp, Cout) bf16 (BN scale folded in, zero-padded rows)
#   bias   : (1, Cout)  f32  (BN shift folded in)
#   out    : (N, Hp2, Wp2, Cout) bf16 (pooled)
# Each grid step processes `ipg` complete images, so the whole pool window is
# always inside the tile (zero fill of the pool border is valid post-ReLU).
# ----------------------------------------------------------------------------
def _stem_kernel(p_ref, w_ref, b_ref, o_ref, *, ipg, Ho, Wh, Hp2):
    acc = jnp.dot(p_ref[...], w_ref[...], preferred_element_type=jnp.float32)
    y = jnp.maximum(acc + b_ref[...], 0.0)                       # BN bias + ReLU (f32)
    C = y.shape[-1]

    # rows are (img, oh, ow%2, ow//2) -> leading-dim split only (layout-free when
    # Wh is a multiple of 8, which holds for the shipped/typical shapes).
    y = y.reshape(ipg, Ho, 2, Wh, C)
    t0 = y[:, :, 0]                      # conv cols 2*pw     (pool tap dw=+1)
    t1 = y[:, :, 1]                      # conv cols 2*pw + 1 (pool tap dw=+2)
    cw = jnp.maximum(t0, t1)
    # tap dw=0 -> conv col 2*pw - 1; zero fill is safe because ReLU already ran.
    t1s = jnp.concatenate([jnp.zeros_like(t1[:, :, :1]), t1[:, :, :-1]], axis=2)
    cw = jnp.maximum(cw, t1s)            # (ipg, Ho, Wp2, C)  w-pooled

    cw = cw.reshape(ipg, Hp2, 2, Wh, C)  # split oh parity (leading dims only)
    r0 = cw[:, :, 0]                     # conv rows 2*ph     (tap dh=+1)
    r1 = cw[:, :, 1]                     # conv rows 2*ph + 1 (tap dh=+2)
    ch = jnp.maximum(r0, r1)
    # tap dh=0 -> conv row 2*ph - 1; zero fill safe post-ReLU.
    r1s = jnp.concatenate([jnp.zeros_like(r1[:, :1]), r1[:, :-1]], axis=1)
    o_ref[...] = jnp.maximum(ch, r1s).astype(o_ref.dtype)


def _fused_stem(patches, w2d, bias, *, N, ipg, Ho, Wh, Hp2):
    M, Kp = patches.shape
    _, C = w2d.shape
    tm = ipg * Ho * 2 * Wh
    kern = functools.partial(_stem_kernel, ipg=ipg, Ho=Ho, Wh=Wh, Hp2=Hp2)
    return pl.pallas_call(
        kern,
        out_shape=jax.ShapeDtypeStruct((N, Hp2, Wh, C), jnp.bfloat16),
        grid_spec=pltpu.PrefetchScalarGridSpec(
            num_scalar_prefetch=0,
            grid=(M // tm,),
            in_specs=[
                pl.BlockSpec((tm, Kp), lambda i: (i, 0)),
                pl.BlockSpec((Kp, C), lambda i: (0, 0)),
                pl.BlockSpec((1, C), lambda i: (0, 0)),
            ],
            out_specs=pl.BlockSpec((ipg, Hp2, Wh, C), lambda i: (i, 0, 0, 0)),
        ),
        compiler_params=pltpu.CompilerParams(
            dimension_semantics=("parallel",),
            vmem_limit_bytes=32 * 1024 * 1024),
    )(patches, w2d, bias)


# ----------------------------------------------------------------------------
# Wrapper: thermal_module.forward (conv1 -> bn1 -> relu -> maxpool), NCHW in/out
# ----------------------------------------------------------------------------
def thermal_module_forward(x_nchw, conv_w, gamma, beta, running_mean, running_var,
                           eps=1e-5, max_rows_per_step=8192):
    N, Cin, H, W = x_nchw.shape
    Cout = conv_w.shape[0]
    assert H % 8 == 0 and W % 8 == 0 and H >= 8 and W >= 8, \
        "stem wrapper assumes H, W divisible by 8"

    Ho, Wo = H // 2, W // 2        # conv1 output spatial
    Hp2, Wp2 = Ho // 2, Wo // 2    # maxpool output spatial
    Wh = Wp2                       # w-parity half width (== Wp2)

    # --- fold eval-mode BN into conv weight / bias (plain-JAX glue)
    scale = gamma / jnp.sqrt(running_var + eps)                        # (Cout,)
    w_hwio = jnp.transpose(conv_w, (2, 3, 1, 0))                       # (7,7,Cin,Cout)
    K = 7 * 7 * Cin
    Kp = ((K + 15) // 16) * 16                                         # 147 -> 160
    w2d = w_hwio.reshape(K, Cout) * scale[None, :]
    w2d = jnp.pad(w2d, ((0, Kp - K), (0, 0))).astype(jnp.bfloat16)
    bias = (beta - running_mean * scale).reshape(1, Cout).astype(jnp.float32)

    # --- im2col in bf16, rows ordered (n, oh, ow%2, ow//2) so the conv output is
    #     already w-parity split for the fused pool epilogue.  K-pad zeros are folded
    #     into the single concatenate (no extra pad pass over the big patch matrix).
    x = jnp.transpose(x_nchw, (0, 2, 3, 1)).astype(jnp.bfloat16)        # NHWC bf16
    xp = jnp.pad(x, ((0, 0), (3, 3), (3, 3), (0, 0)))
    cols = []
    for kh in range(7):
        for kw in range(7):
            s0 = xp[:, kh:kh + 2 * Ho:2, kw:kw + 4 * Wh:4, :]           # ow even
            s1 = xp[:, kh:kh + 2 * Ho:2, kw + 2:kw + 2 + 4 * Wh:4, :]   # ow odd
            cols.append(jnp.stack([s0, s1], axis=2))                    # (N,Ho,2,Wh,Cin)
    if Kp > K:
        cols.append(jnp.zeros((N, Ho, 2, Wh, Kp - K), jnp.bfloat16))
    pats = jnp.concatenate(cols, axis=-1)                               # (N,Ho,2,Wh,Kp)
    M = N * Ho * Wo
    pats2 = pats.reshape(M, Kp)                                         # no M-pad

    # --- whole-image row tiles: amortize grid overhead, keep the full pool window
    #     inside each tile, keep >= min(N,4) parallel steps for v7x's 2 TensorCores.
    rows_per_img = Ho * Wo
    ipg = max(1, min(N, max_rows_per_step // rows_per_img))
    ipg = min(ipg, max(1, N // min(N, 4)))
    while N % ipg:
        ipg -= 1
    tm = ipg * rows_per_img

    # crude VMEM budget check (patch double-buffer + f32 epilogue temporaries + out)
    vmem_est = (2 * tm * Kp * 2 + 5 * tm * Cout * 4
                + 2 * ipg * Hp2 * Wp2 * Cout * 2 + 4 * Kp * Cout)
    # TODO(synk): for very large single images (> ~320^2) fall back to oh-tiling
    #             with a separate H-pool kernel instead of whole-image tiles.
    assert vmem_est <= 28 * 1024 * 1024, \
        f"per-step working set {vmem_est} B exceeds the 32 MiB scoped VMEM budget"

    out = _fused_stem(pats2, w2d, bias, N=N, ipg=ipg, Ho=Ho, Wh=Wh, Hp2=Hp2)
    return jnp.transpose(out, (0, 3, 1, 2)).astype(jnp.float32)         # NCHW f32


# ----------------------------------------------------------------------------
# Pure-JAX f32 reference for validation
# ----------------------------------------------------------------------------
def reference_forward(x_nchw, conv_w, gamma, beta, running_mean, running_var, eps=1e-5):
    x = jnp.transpose(x_nchw, (0, 2, 3, 1))
    y = jax.lax.conv_general_dilated(
        x, jnp.transpose(conv_w, (2, 3, 1, 0)),
        window_strides=(2, 2), padding=((3, 3), (3, 3)),
        dimension_numbers=('NHWC', 'HWIO', 'NHWC'))
    scale = gamma / jnp.sqrt(running_var + eps)
    y = jnp.maximum(y * scale + (beta - running_mean * scale), 0.0)
    y = jax.lax.reduce_window(
        y, -jnp.inf, jax.lax.max,
        window_dimensions=(1, 3, 3, 1), window_strides=(1, 2, 2, 1),
        padding=((0, 0), (1, 1), (1, 1), (0, 0)))
    return jnp.transpose(y, (0, 3, 1, 2))


if __name__ == "__main__":
    key = jax.random.PRNGKey(0)
    k_x, k_w, k_g, k_b, k_m, k_v = jax.random.split(key, 6)

    # small but representative shapes: ResNet stem has 3 input channels, 64 output
    N, Cin, H, W = 2, 3, 32, 32
    Cout = 64

    x = jax.random.normal(k_x, (N, Cin, H, W), dtype=jnp.float32)
    conv_w = jax.random.normal(k_w, (Cout, Cin, 7, 7), dtype=jnp.float32) * 0.05
    gamma = 0.5 + jax.random.uniform(k_g, (Cout,), dtype=jnp.float32)
    beta = jax.random.normal(k_b, (Cout,), dtype=jnp.float32) * 0.1
    running_mean = jax.random.normal(k_m, (Cout,), dtype=jnp.float32) * 0.1
    running_var = 0.5 + jax.random.uniform(k_v, (Cout,), dtype=jnp.float32)

    out = thermal_module_forward(x, conv_w, gamma, beta, running_mean, running_var)
    out = jax.block_until_ready(out)

    ref = jax.block_until_ready(
        reference_forward(x, conv_w, gamma, beta, running_mean, running_var))

    assert out.shape == (N, Cout, H // 4, W // 4), out.shape
    # bf16 matmul inputs / bf16 pooled-output storage -> loose tolerance vs f32 ref
    assert jnp.allclose(out, ref, rtol=5e-2, atol=5e-2), \
        float(jnp.max(jnp.abs(out - ref)))

    print("KERNEL_OK")
</pallas_src>

<mosaic_0001>
module attributes {stable_mosaic.version = 11 : i64} {
  func.func @_stem_kernel(%arg0: i32, %arg1: memref<256x160xbf16, #tpu.memory_space<vmem>>, %arg2: memref<160x64xbf16, #tpu.memory_space<vmem>>, %arg3: memref<1x64xf32, #tpu.memory_space<vmem>>, %arg4: memref<1x8x8x64xbf16, #tpu.memory_space<vmem>>) attributes {dimension_semantics = [#tpu.dimension_semantics<parallel>], iteration_bounds = array<i64: 2>, scalar_prefetch = 0 : i64, scratch_operands = 0 : i64, tpu.core_type = #tpu.core_type<tc>, window_params = [{transform_indices = @transform_0, window_bounds = array<i64: 256, 160>}, {pipeline_mode = #tpu.pipeline_mode<synchronous>, transform_indices = @transform_1, window_bounds = array<i64: 160, 64>}, {pipeline_mode = #tpu.pipeline_mode<synchronous>, transform_indices = @transform_2, window_bounds = array<i64: 1, 64>}, {transform_indices = @transform_3, window_bounds = array<i64: 1, 8, 8, 64>}]} {
    %c0 = arith.constant 0 : index
    %c0_0 = arith.constant 0 : index
    %0 = vector.load %arg1[%c0, %c0_0] : memref<256x160xbf16, #tpu.memory_space<vmem>>, vector<256x160xbf16>
    %c0_1 = arith.constant 0 : index
    %c0_2 = arith.constant 0 : index
    %1 = vector.load %arg2[%c0_1, %c0_2] : memref<160x64xbf16, #tpu.memory_space<vmem>>, vector<160x64xbf16>
    %cst = arith.constant dense<0.000000e+00> : vector<256x64xf32>
    %2 = tpu.matmul %0, %1, %cst {dimension_numbers = #tpu.dot_dimension_numbers<[1], [0], [0], [1], [0, 0, 1, 1], [], []>} : vector<256x160xbf16>, vector<160x64xbf16>, vector<256x64xf32> -> vector<256x64xf32>
    %c0_3 = arith.constant 0 : index
    %c0_4 = arith.constant 0 : index
    %3 = vector.load %arg3[%c0_3, %c0_4] : memref<1x64xf32, #tpu.memory_space<vmem>>, vector<1x64xf32>
    %4 = vector.broadcast %3 : vector<1x64xf32> to vector<256x64xf32>
    %5 = arith.addf %2, %4 : vector<256x64xf32>
    %cst_5 = arith.constant 0.000000e+00 : f32
    %6 = vector.broadcast %cst_5 : f32 to vector<256x64xf32>
    %7 = arith.maximumf %5, %6 : vector<256x64xf32>
    %8 = vector.shape_cast %7 : vector<256x64xf32> to vector<1x16x2x8x64xf32>
    %9 = vector.extract_strided_slice %8 {offsets = [0, 0, 0, 0, 0], sizes = [1, 16, 1, 8, 64], strides = [1, 1, 1, 1, 1]} : vector<1x16x2x8x64xf32> to vector<1x16x1x8x64xf32>
    %10 = vector.shape_cast %9 : vector<1x16x1x8x64xf32> to vector<1x16x8x64xf32>
    %11 = vector.extract_strided_slice %8 {offsets = [0, 0, 1, 0, 0], sizes = [1, 16, 1, 8, 64], strides = [1, 1, 1, 1, 1]} : vector<1x16x2x8x64xf32> to vector<1x16x1x8x64xf32>
    %12 = vector.shape_cast %11 : vector<1x16x1x8x64xf32> to vector<1x16x8x64xf32>
    %13 = arith.maximumf %10, %12 : vector<1x16x8x64xf32>
    %cst_6 = arith.constant 0.000000e+00 : f32
    %14 = vector.broadcast %cst_6 : f32 to vector<1x16x1x64xf32>
    %15 = vector.extract_strided_slice %12 {offsets = [0, 0, 0, 0], sizes = [1, 16, 7, 64], strides = [1, 1, 1, 1]} : vector<1x16x8x64xf32> to vector<1x16x7x64xf32>
    %16 = tpu.concatenate %14, %15 in 2 : vector<1x16x1x64xf32>, vector<1x16x7x64xf32> -> vector<1x16x8x64xf32>
    %17 = arith.maximumf %13, %16 : vector<1x16x8x64xf32>
    %18 = vector.shape_cast %17 : vector<1x16x8x64xf32> to vector<1x8x2x8x64xf32>
    %19 = vector.extract_strided_slice %18 {offsets = [0, 0, 0, 0, 0], sizes = [1, 8, 1, 8, 64], strides = [1, 1, 1, 1, 1]} : vector<1x8x2x8x64xf32> to vector<1x8x1x8x64xf32>
    %20 = vector.shape_cast %19 : vector<1x8x1x8x64xf32> to vector<1x8x8x64xf32>
    %21 = vector.extract_strided_slice %18 {offsets = [0, 0, 1, 0, 0], sizes = [1, 8, 1, 8, 64], strides = [1, 1, 1, 1, 1]} : vector<1x8x2x8x64xf32> to vector<1x8x1x8x64xf32>
    %22 = vector.shape_cast %21 : vector<1x8x1x8x64xf32> to vector<1x8x8x64xf32>
    %23 = arith.maximumf %20, %22 : vector<1x8x8x64xf32>
    %cst_7 = arith.constant 0.000000e+00 : f32
    %24 = vector.broadcast %cst_7 : f32 to vector<1x1x8x64xf32>
    %25 = vector.extract_strided_slice %22 {offsets = [0, 0, 0, 0], sizes = [1, 7, 8, 64], strides = [1, 1, 1, 1]} : vector<1x8x8x64xf32> to vector<1x7x8x64xf32>
    %26 = tpu.concatenate %24, %25 in 1 : vector<1x1x8x64xf32>, vector<1x7x8x64xf32> -> vector<1x8x8x64xf32>
    %27 = arith.maximumf %23, %26 : vector<1x8x8x64xf32>
    %28 = arith.truncf %27 : vector<1x8x8x64xf32> to vector<1x8x8x64xbf16>
    %c0_8 = arith.constant 0 : index
    %c0_9 = arith.constant 0 : index
    %c0_10 = arith.constant 0 : index
    %c0_11 = arith.constant 0 : index
    %29 = vector.load %arg4[%c0_8, %c0_9, %c0_10, %c0_11] : memref<1x8x8x64xbf16, #tpu.memory_space<vmem>>, vector<1x8x8x64xbf16>
    tpu.vector_store %arg4[%c0_8, %c0_9, %c0_10, %c0_11], %28 {strides = array<i32>} : memref<1x8x8x64xbf16, #tpu.memory_space<vmem>>, vector<1x8x8x64xbf16>,
    return
  }
  func.func @transform_0(%arg0: i32) -> (i32, i32) {
    %c0_i32 = arith.constant 0 : i32
    %c0_i32_0 = arith.constant 0 : i32
    return %arg0, %c0_i32 : i32, i32
  }
  func.func @transform_1(%arg0: i32) -> (i32, i32) {
    %c0_i32 = arith.constant 0 : i32
    %c0_i32_0 = arith.constant 0 : i32
    %c0_i32_1 = arith.constant 0 : i32
    return %c0_i32, %c0_i32_0 : i32, i32
  }
  func.func @transform_2(%arg0: i32) -> (i32, i32) {
    %c0_i32 = arith.constant 0 : i32
    %c0_i32_0 = arith.constant 0 : i32
    %c0_i32_1 = arith.constant 0 : i32
    return %c0_i32, %c0_i32_0 : i32, i32
  }
  func.func @transform_3(%arg0: i32) -> (i32, i32, i32, i32) {
    %c0_i32 = arith.constant 0 : i32
    %c0_i32_0 = arith.constant 0 : i32
    %c0_i32_1 = arith.constant 0 : i32
    %c0_i32_2 = arith.constant 0 : i32
    return %arg0, %c0_i32, %c0_i32_0, %c0_i32_1 : i32, i32, i32, i32
  }
}

</mosaic_0001>

<bundles_post_ra>
// kernel: tpu_custom_call.1
= control target key start
LH: loop header
LB: loop body
LE: loop exit
PB: predicated region body
PF: predicated region fallthrough
CT: control target
= control target key end

     0   :  { %8 = vsyncpa [#allocation3], 0  ;;  %s1445_s0 = inlined_call_operand.vmem [shape: bf16[512,160], index: 0, kind: input, shape index: {}]   ;;  %s1446_s1 = inlined_call_operand.vmem [shape: bf16[160,64], index: 1, kind: input, shape index: {}]   ;;  %s1447_s2 = inlined_call_operand.vmem [shape: f32[1,64], index: 2, kind: input, shape index: {}]   ;;  %s1448_s3 = inlined_call_operand.hbm [shape: bf16[2,8,8,64], index: 3, kind: output, shape index: {}]  }
   0x1   :  { %10 = vsyncpa [#allocation3 + $0x1], 0  ;;  %s1168_s12 = smov 0   ;;  %s1170_s13 = smov 0  }
   0x2   :  { %s1172_s14 = smov 0   ;;  %s1174_s15 = smov 0  }
   0x3 LB: > { %s1189_s16 = sadd.s32 4294967295, %s1142_s15   ;;  %s886_s17 = sadd.s32 4294967294, %s1142_s15   ;;  %s1142_s15 = sphi %s1174_s15, %s1454_s15   ;;  %s1138_s14 = sphi %s1172_s14, %s1453_s14   ;;  %s1134_s13 = sphi %s1170_s13, %s1452_s13   ;;  %s1130_s12 = sphi %s1168_s12, %s1451_s12  }
   0x4   : > { %s1193_s18 = sadd.s32 1, %s1142_s15   ;;  %s91_s19 = sadd.s32 1, %s1138_s14 }
   0x5   : > { %s88_s20 = ssub.s32 %s1142_s15, %s1193_s18  ;;  %p101_p0 = scmp.ne.s32.totalorder %s1138_s14, %s1134_s13 }
   0x6   : > { %p89_p1 = scmp.eq.s32.totalorder %s88_s20, 0  ;;  %p102_p2 = scmp.eq.s32.totalorder %s1189_s16, 1 }
   0x7   : > { %p107_p3 = scmp.ne.s32.totalorder %s1134_s13, %s1130_s12  ;;  %p108_p4 = scmp.eq.s32.totalorder %s886_s17, 1 }
   0x8   : > { %s1204_s21 = scalar_select %p89_p1, %s1138_s14, %s91_s19  }
   0x9   : > { %p1206_p5 = por %p102_p2, %p101_p0  ;;  %p1210_p6 = por %p108_p4, %p107_p3 }
   0xa   : > { %p889_p7 = scmp.ge.s32.totalorder %s1142_s15, 1  ;;  %p142_p8 = scmp.lt.s32.totalorder %s1142_s15, 3 }
   0xc   : > { %p143_p9 = pnand %p889_p7, %p142_p8 }
   0xd   : > { %v1022_v0 = vld [vmem:[%s1446_s1] sm:$0xff] (!%p143_p9)   ;;  %v1144_v1 = vmov (!%p143_p9), 0   ;;  %s891_s26 = sshll.u32 (!%p143_p9), %s1189_s16, 5  ;;  %v1023_v2 = vld [vmem:[%s1446_s1 + $0x8] sm:$0xff] (!%p143_p9)   ;;  %v1024_v3 = vld [vmem:[%s1446_s1 + $0x10] sm:$0xff] (!%p143_p9)   ;;  %vm438_vm0 = vcmask (!%p143_p9), 261120  }
   0xe   : > { %146 = sbr.rel (%p143_p9) target bundleno = 354 (0x162), region = 32  ;;  %487 = vmatprep.subr.bf16.mxu0 (!%p143_p9), %v1144_v1  ;;  %960 = vmatprep.subr.bf16.mxu1 (!%p143_p9), %v1144_v1  ;;  %p168_p10 = scmp.lt.s32.totalorder (!%p143_p9), %s891_s26, 63  ;;  %v1025_v4 = vld [vmem:[%s1446_s1 + $0x18] sm:$0xff] (!%p143_p9)   ;;  %v1026_v7 = vld [vmem:[%s1446_s1 + $0x20] sm:$0xff] (!%p143_p9)   ;;  %v1027_v8 = vld [vmem:[%s1446_s1 + $0x28] sm:$0xff] (!%p143_p9)   ;;  %vm744_vm1 = vcmask (!%p143_p9), 1040384  }
   0xf   : > { %488 = vmatpush1.bf16.msra.mxu0 (!%p143_p9), %v1022_v0  ;;  %970 = vmatpush1.bf16.msra.mxu1 (!%p143_p9), %v1022_v0  ;;  %v1028_v9 = vld [vmem:[%s1446_s1 + $0x30] sm:$0xff] (!%p143_p9)   ;;  %v1029_v10 = vld [vmem:[%s1446_s1 + $0x38] sm:$0xff] (!%p143_p9)   ;;  %v1030_v11 = vld [vmem:[%s1446_s1 + $0x40] sm:$0xff] (!%p143_p9)   ;;  %s164_s6 = sand.u32 (!%p143_p9), 1, %s1134_s13   ;;  %vm801_vm2 = vcmask (!%p143_p9), 519168   ;;  %s959_s9 = sshll.u32 (!%p143_p9), %s1189_s16, 9 }
  0x10   : > { %489 = vmatprep.subr.bf16.mxu0 (!%p143_p9), %v1144_v1  ;;  %961 = vmatprep.subr.bf16.mxu1 (!%p143_p9), %v1144_v1  ;;  %v1031_v12 = vld [vmem:[%s1446_s1 + $0x48] sm:$0xff] (!%p143_p9)   ;;  %v1303_v43 = vld [vmem:[%s1447_s2] ss:$0 sm:$0xff] (!%p143_p9)  ;;  %s1392_s19 = scalar_lea.hbm (!%p143_p9), %s1448_s3, %s959_s9  ;;  %s1404_s16 = scalar_lea.sflag (!%p143_p9), [#allocation3], %s164_s6 }
  0x11   : > { %s1145_s24 = smov (!%p143_p9), [#allocation2]  }
  0x12   : > { %s1084_s25 = sshll.u32 (!%p143_p9), %s1145_s24, 4  ;;  %s1085_s25 = int_to_ptr.vmem [resolvable:$false] %s1084_s25 }
  0x13   : > { %490 = vmatpush1.bf16.msra.mxu0 (!%p143_p9), %v1023_v2  ;;  %971 = vmatpush1.bf16.msra.mxu1 (!%p143_p9), %v1023_v2 }
  0x14   : > { %491 = vmatprep.subr.bf16.mxu0 (!%p143_p9), %v1144_v1  ;;  %962 = vmatprep.subr.bf16.mxu1 (!%p143_p9), %v1144_v1 }
  0x15   : > { %s1456_s26 = smov (!%p168_p10, %s891_s26), 63 }
  0x16   : > { %s958_s4 = sshll.u32 %s1456_s26, 3  ;;  %s1086_s26 = scalar_lea.vmem %s1085_s25, 1024 }
  0x17   : > { %s1229_s7 = scalar_lea.vmem %s1445_s0, %s958_s4  ;;  %492 = vmatpush1.bf16.msra.mxu0 %v1024_v3  ;;  %972 = vmatpush1.bf16.msra.mxu1 %v1024_v3 }
  0x18   : > { %493 = vmatprep.subr.bf16.mxu0 %v1144_v1  ;;  %963 = vmatprep.subr.bf16.mxu1 %v1144_v1  ;;  %v1034_v5 = vld [vmem:[%s1229_s7 + $0x4] ss:$8 sps:$4 sm:$0xff]   ;;  %v1032_v13 = vld [vmem:[%s1229_s7] ss:$8 sps:$4 sm:$0xff]   ;;  %v1038_v15 = vld [vmem:[%s1229_s7 + $0x14] ss:$8 sps:$4 sm:$0xff]  }
  0x19   : > { %v1037_v6 = vld [vmem:[%s1229_s7 + $0x84] ss:$8 sps:$4 sm:$0xff]   ;;  %937 = vmatprep.mubr.msk.bf16.mxu0 %vm438_vm0, %v1034_v5  ;;  %v1035_v14 = vld [vmem:[%s1229_s7 + $0x80] ss:$8 sps:$4 sm:$0xff]   ;;  %v1040_v16 = vld [vmem:[%s1229_s7 + $0x94] ss:$8 sps:$4 sm:$0xff]  }
  0x1a   : > { %945 = vmatprep.mubr.msk.bf16.mxu1 %vm438_vm0, %v1037_v6  ;;  %v1042_v17 = vld [vmem:[%s1229_s7 + $0x10] ss:$8 sps:$4 sm:$0xff]   ;;  %v1044_v19 = vld [vmem:[%s1229_s7 + $0x24] ss:$8 sps:$4 sm:$0xff]   ;;  %v1048_v21 = vld [vmem:[%s1229_s7 + $0x20] ss:$8 sps:$4 sm:$0xff]  }
  0x1b   : > { %494 = vmatpush1.bf16.msra.mxu0 %v1025_v4  ;;  %973 = vmatpush1.bf16.msra.mxu1 %v1025_v4  ;;  %v1043_v18 = vld [vmem:[%s1229_s7 + $0x90] ss:$8 sps:$4 sm:$0xff]   ;;  %v1046_v20 = vld [vmem:[%s1229_s7 + $0xa4] ss:$8 sps:$4 sm:$0xff]   ;;  %v1049_v22 = vld [vmem:[%s1229_s7 + $0xa0] ss:$8 sps:$4 sm:$0xff]  }
  0x1c   : > { %495 = vmatprep.subr.bf16.mxu0 %v1144_v1  ;;  %964 = vmatprep.subr.bf16.mxu1 %v1144_v1  ;;  %v1050_v23 = vld [vmem:[%s1229_s7 + $0x34] ss:$8 sps:$4 sm:$0xff]   ;;  %v1054_v25 = vld [vmem:[%s1229_s7 + $0x30] ss:$8 sps:$4 sm:$0xff]   ;;  %v1056_v27 = vld [vmem:[%s1229_s7 + $0x44] ss:$8 sps:$4 sm:$0xff]  }
  0x1d   : > { %v1052_v24 = vld [vmem:[%s1229_s7 + $0xb4] ss:$8 sps:$4 sm:$0xff]   ;;  %v1055_v26 = vld [vmem:[%s1229_s7 + $0xb0] ss:$8 sps:$4 sm:$0xff]   ;;  %v1058_v28 = vld [vmem:[%s1229_s7 + $0xc4] ss:$8 sps:$4 sm:$0xff]  }
  0x1e   : > { %v1060_v29 = vld [vmem:[%s1229_s7 + $0x40] ss:$8 sps:$4 sm:$0xff]   ;;  %v1062_v31 = vld [vmem:[%s1229_s7 + $0x54] ss:$8 sps:$4 sm:$0xff]   ;;  %v1066_v33 = vld [vmem:[%s1229_s7 + $0x50] ss:$8 sps:$4 sm:$0xff]  }
  0x1f   : > { %496 = vmatpush1.bf16.msra.mxu0 %v1026_v7  ;;  %974 = vmatpush1.bf16.msra.mxu1 %v1026_v7  ;;  %v1061_v30 = vld [vmem:[%s1229_s7 + $0xc0] ss:$8 sps:$4 sm:$0xff]   ;;  %v1064_v32 = vld [vmem:[%s1229_s7 + $0xd4] ss:$8 sps:$4 sm:$0xff]   ;;  %v1067_v34 = vld [vmem:[%s1229_s7 + $0xd0] ss:$8 sps:$4 sm:$0xff]  }
  0x20   : > { %497 = vmatprep.subr.bf16.mxu0 %v1144_v1  ;;  %965 = vmatprep.subr.bf16.mxu1 %v1144_v1  ;;  %v1068_v35 = vld [vmem:[%s1229_s7 + $0x64] ss:$8 sps:$4 sm:$0xff]   ;;  %v1072_v37 = vld [vmem:[%s1229_s7 + $0x60] ss:$8 sps:$4 sm:$0xff]   ;;  %v1074_v39 = vld [vmem:[%s1229_s7 + $0x74] ss:$8 sps:$4 sm:$0xff]  }
  0x21   : > { %v1070_v36 = vld [vmem:[%s1229_s7 + $0xe4] ss:$8 sps:$4 sm:$0xff]   ;;  %v1073_v38 = vld [vmem:[%s1229_s7 + $0xe0] ss:$8 sps:$4 sm:$0xff]   ;;  %v1076_v40 = vld [vmem:[%s1229_s7 + $0xf4] ss:$8 sps:$4 sm:$0xff]  }
  0x22   : > { %v1078_v41 = vld [vmem:[%s1229_s7 + $0x70] ss:$8 sps:$4 sm:$0xff]  }
  0x23   : > { %498 = vmatpush1.bf16.msra.mxu0 %v1027_v8  ;;  %975 = vmatpush1.bf16.msra.mxu1 %v1027_v8  ;;  %v1079_v42 = vld [vmem:[%s1229_s7 + $0xf0] ss:$8 sps:$4 sm:$0xff]   ;;  %s890_s7 = sshll.u32 %s164_s6, 5 }
  0x24   : > { %499 = vmatprep.subr.bf16.mxu0 %v1144_v1  ;;  %966 = vmatprep.subr.bf16.mxu1 %v1144_v1  ;;  %s1336_s8 = scalar_lea.vmem [#allocation2], %s890_s7 }
  0x25   : > { %s824_s10 = sshll.u32 %s1336_s8, 4  ;;  %s1394_s10 = int_to_ptr.vmem [resolvable:$true] %s824_s10 }
  0x26   : > { %s1080_s20 = scalar_lea.vmem %s1394_s10, 512  ;;  %p1087_p0 = scmp.lt.s32.totalorder %s1394_s10, %s1085_s25 }
  0x27   : > { %500 = vmatpush1.bf16.msra.mxu0 %v1028_v9  ;;  %976 = vmatpush1.bf16.msra.mxu1 %v1028_v9  ;;  %p1081_p11 = scmp.ne.s32.totalorder %s1394_s10, %s1080_s20  ;;  %p1088_p1 = scmp.lt.s32.totalorder %s1086_s26, %s1080_s20 }
  0x28   : > { %501 = vmatprep.subr.bf16.mxu0 %v1144_v1  ;;  %967 = vmatprep.subr.bf16.mxu1 %v1144_v1 }
  0x29   : > { %p1082_p12 = pnand %p1081_p11, %p1206_p5  ;;  %p1089_p2 = por %p1088_p1, %p1087_p0 }
  0x2b   : > { %502 = vmatpush1.bf16.msra.mxu0 %v1029_v10  ;;  %977 = vmatpush1.bf16.msra.mxu1 %v1029_v10  ;;  %p1083_p13 = pneg %p1082_p12 }
  0x2c   : > { %503 = vmatprep.subr.bf16.mxu0 %v1144_v1  ;;  %968 = vmatprep.subr.bf16.mxu1 %v1144_v1 }
  0x2d   : > { %p1090_p3 = pnand %p1089_p2, %p1083_p13 }
  0x2f   : > { %504 = vmatpush1.bf16.msra.mxu0 %v1030_v11  ;;  %978 = vmatpush1.bf16.msra.mxu1 %v1030_v11 }
  0x30   : > { %505 = vmatprep.subr.bf16.mxu0 %v1144_v1  ;;  %969 = vmatprep.subr.bf16.mxu1 %v1144_v1 }
  0x33   : > { %506 = vmatpush1.bf16.msra.mxu0 %v1031_v12  ;;  %979 = vmatpush1.bf16.msra.mxu1 %v1031_v12 }
  0x36   : > { %520 = vmatmul.mubr.bf16.vlgmr.msra.gmra.mrb[0].mxu0 %v1032_v13  ;;  %584 = vmatmul.mubr.bf16.vlgmr.msra.gmra.mrb[0].mxu1 %v1035_v14 }
  0x37   : > { %938 = vmatprep.mubr.msk.bf16.mxu0 %vm438_vm0, %v1038_v15  ;;  %946 = vmatprep.mubr.msk.bf16.mxu1 %vm438_vm0, %v1040_v16 }
  0x3e   : > { %528 = vmatmul.mubr.bf16.gmra.mrb[4].mxu0 %v1042_v17  ;;  %592 = vmatmul.mubr.bf16.gmra.mrb[4].mxu1 %v1043_v18 }
  0x3f   : > { %939 = vmatprep.mubr.msk.bf16.mxu0 %vm438_vm0, %v1044_v19  ;;  %947 = vmatprep.mubr.msk.bf16.mxu1 %vm438_vm0, %v1046_v20 }
  0x46   : > { %536 = vmatmul.mubr.bf16.gmra.mrb[8].mxu0 %v1048_v21  ;;  %600 = vmatmul.mubr.bf16.gmra.mrb[8].mxu1 %v1049_v22 }
  0x47   : > { %940 = vmatprep.mubr.msk.bf16.mxu0 %vm438_vm0, %v1050_v23  ;;  %948 = vmatprep.mubr.msk.bf16.mxu1 %vm438_vm0, %v1052_v24 }
  0x4e   : > { %544 = vmatmul.mubr.bf16.gmra.mrb[12].mxu0 %v1054_v25  ;;  %608 = vmatmul.mubr.bf16.gmra.mrb[12].mxu1 %v1055_v26 }
  0x4f   : > { %941 = vmatprep.mubr.msk.bf16.mxu0 %vm438_vm0, %v1056_v27  ;;  %949 = vmatprep.mubr.msk.bf16.mxu1 %vm438_vm0, %v1058_v28 }
  0x56   : > { %552 = vmatmul.mubr.bf16.gmra.mrb[16].mxu0 %v1060_v29  ;;  %616 = vmatmul.mubr.bf16.gmra.mrb[16].mxu1 %v1061_v30 }
  0x57   : > { %942 = vmatprep.mubr.msk.bf16.mxu0 %vm438_vm0, %v1062_v31  ;;  %950 = vmatprep.mubr.msk.bf16.mxu1 %vm438_vm0, %v1064_v32 }
  0x5e   : > { %560 = vmatmul.mubr.bf16.gmra.mrb[20].mxu0 %v1066_v33  ;;  %624 = vmatmul.mubr.bf16.gmra.mrb[20].mxu1 %v1067_v34 }
  0x5f   : > { %943 = vmatprep.mubr.msk.bf16.mxu0 %vm438_vm0, %v1068_v35  ;;  %951 = vmatprep.mubr.msk.bf16.mxu1 %vm438_vm0, %v1070_v36 }
  0x66   : > { %568 = vmatmul.mubr.bf16.gmra.mrb[24].mxu0 %v1072_v37  ;;  %632 = vmatmul.mubr.bf16.gmra.mrb[24].mxu1 %v1073_v38 }
  0x67   : > { %944 = vmatprep.mubr.msk.bf16.mxu0 %vm438_vm0, %v1074_v39  ;;  %952 = vmatprep.mubr.msk.bf16.mxu1 %vm438_vm0, %v1076_v40 }
  0x6e   : > { %576 = vmatmul.mubr.bf16.gmra.mrb[28].mxu0 %v1078_v41  ;;  %640 = vmatmul.mubr.bf16.gmra.mrb[28].mxu1 %v1079_v42 }
 0x109   : > { %v521_v44 = vpop.f32.mrb[0].mxu0  ;;  %v585_v45 = vpop.f32.mrb[0].mxu1 }
 0x10a   : > { %v522_v46 = vadd.f32 %v1303_v43, %v521_v44  ;;  %v586_v47 = vadd.f32 %v1303_v43, %v585_v45  ;;  %v523_v48 = vpop.f32.mrb[1].mxu0  ;;  %v587_v49 = vpop.f32.mrb[1].mxu1 }
 0x10b   : > { %v524_v50 = vpop.f32.mrb[2].mxu0  ;;  %v588_v51 = vpop.f32.mrb[2].mxu1 }
 0x10c   : > { %v525_v52 = vadd.f32 %v1303_v43, %v524_v50  ;;  %v589_v53 = vadd.f32 %v1303_v43, %v588_v51  ;;  %v526_v54 = vpop.f32.mrb[3].mxu0  ;;  %v590_v55 = vpop.f32.mrb[3].mxu1  ;;  %v648_v56 = vmax.f32 %v522_v46, 0.0  ;;  %v664_v57 = vmax.f32 %v586_v47, 0.0 }
 0x10e   : > { %v649_v58 = vmax.f32 %v525_v52, 0.0  ;;  %v665_v59 = vmax.f32 %v589_v53, 0.0 }
 0x110   : > { %v680_v60 = vmax.f32 %v648_v56, %v649_v58  ;;  %v712_v61 = vrot.slane %v649_v58, 7  ;;  %v688_v62 = vmax.f32 %v664_v57, %v665_v59  ;;  %v720_v63 = vrot.slane %v665_v59, 7 }
 0x111   : > { %v529_v0 = vpop.f32.mrb[4].mxu0  ;;  %v593_v1 = vpop.f32.mrb[4].mxu1 }
 0x112   : > { %v745_v2 = vsel %vm744_vm1, 0.0, %v712_v61  ;;  %v753_v3 = vsel %vm744_vm1, 0.0, %v720_v63  ;;  %v530_v4 = vadd.f32 %v1303_v43, %v529_v0  ;;  %v594_v5 = vadd.f32 %v1303_v43, %v593_v1  ;;  %v531_v6 = vpop.f32.mrb[5].mxu0  ;;  %v595_v7 = vpop.f32.mrb[5].mxu1 }
 0x113   : > { %v761_v8 = vmax.f32 %v680_v60, %v745_v2  ;;  %v769_v9 = vmax.f32 %v688_v62, %v753_v3  ;;  %v532_v10 = vpop.f32.mrb[6].mxu0  ;;  %v596_v11 = vpop.f32.mrb[6].mxu1 }
 0x114   : > { %v533_v12 = vadd.f32 %v1303_v43, %v532_v10  ;;  %v597_v13 = vadd.f32 %v1303_v43, %v596_v11  ;;  %v534_v14 = vpop.f32.mrb[7].mxu0  ;;  %v598_v15 = vpop.f32.mrb[7].mxu1  ;;  %v650_v16 = vmax.f32 %v530_v4, 0.0  ;;  %v666_v17 = vmax.f32 %v594_v5, 0.0 }
 0x116   : > { %v651_v18 = vmax.f32 %v533_v12, 0.0  ;;  %v667_v19 = vmax.f32 %v597_v13, 0.0 }
 0x118   : > { %v681_v20 = vmax.f32 %v650_v16, %v651_v18  ;;  %v713_v21 = vrot.slane %v651_v18, 7  ;;  %v689_v22 = vmax.f32 %v666_v17, %v667_v19  ;;  %v721_v23 = vrot.slane %v667_v19, 7 }
 0x119   : > { %v537_v24 = vpop.f32.mrb[8].mxu0  ;;  %v601_v25 = vpop.f32.mrb[8].mxu1 }
 0x11a   : > { %v746_v26 = vsel %vm744_vm1, 0.0, %v713_v21  ;;  %v754_v27 = vsel %vm744_vm1, 0.0, %v721_v23  ;;  %v538_v28 = vadd.f32 %v1303_v43, %v537_v24  ;;  %v602_v29 = vadd.f32 %v1303_v43, %v601_v25  ;;  %v539_v30 = vpop.f32.mrb[9].mxu0  ;;  %v603_v31 = vpop.f32.mrb[9].mxu1 }
 0x11b   : > { %v1320_v32 = vmax.f32 %v681_v20, %v746_v26  ;;  %v1322_v33 = vmax.f32 %v689_v22, %v754_v27  ;;  %v540_v34 = vpop.f32.mrb[10].mxu0  ;;  %v604_v35 = vpop.f32.mrb[10].mxu1 }
 0x11c   : > { %v541_v36 = vadd.f32 %v1303_v43, %v540_v34  ;;  %v605_v37 = vadd.f32 %v1303_v43, %v604_v35  ;;  %v542_v38 = vpop.f32.mrb[11].mxu0  ;;  %v606_v39 = vpop.f32.mrb[11].mxu1  ;;  %v652_v42 = vmax.f32 %v538_v28, 0.0  ;;  %v668_v44 = vmax.f32 %v602_v29, 0.0 }
 0x11d   : > { %v777_v40 = vmax.f32 %v761_v8, %v1320_v32  ;;  %v1330_v41 = vmax.f32 %v769_v9, %v1322_v33 }
 0x11e   : > { %v653_v45 = vmax.f32 %v541_v36, 0.0  ;;  %v669_v46 = vmax.f32 %v605_v37, 0.0 }
 0x11f   : > { %v785_v47 = vmax.f32 %v777_v40, 0.0 }
 0x120   : > { %v682_v48 = vmax.f32 %v652_v42, %v653_v45  ;;  %v714_v49 = vrot.slane %v653_v45, 7  ;;  %v690_v50 = vmax.f32 %v668_v44, %v669_v46  ;;  %v722_v51 = vrot.slane %v669_v46, 7 }
 0x121   : > { %v793_v52 = vpack.c.bf16 %v785_v47, %v785_v47  ;;  %v545_v53 = vpop.f32.mrb[12].mxu0  ;;  %v609_v54 = vpop.f32.mrb[12].mxu1 }
 0x122   : > { %v747_v55 = vsel %vm744_vm1, 0.0, %v714_v49  ;;  %v755_v56 = vsel %vm744_vm1, 0.0, %v722_v51  ;;  %v546_v57 = vadd.f32 %v1303_v43, %v545_v53  ;;  %v610_v58 = vadd.f32 %v1303_v43, %v609_v54  ;;  %v547_v59 = vpop.f32.mrb[13].mxu0  ;;  %v611_v60 = vpop.f32.mrb[13].mxu1 }
 0x123   : > { %802 = vst.msk [vmem:[%s1336_s8] sm:$0xf] %vm801_vm2, %v793_v52  ;;  %v763_v61 = vmax.f32 %v682_v48, %v747_v55  ;;  %v771_v62 = vmax.f32 %v690_v50, %v755_v56  ;;  %v548_v63 = vpop.f32.mrb[14].mxu0  ;;  %v612_v0 = vpop.f32.mrb[14].mxu1 }
 0x124   : > { %v549_v1 = vadd.f32 %v1303_v43, %v548_v63  ;;  %v613_v2 = vadd.f32 %v1303_v43, %v612_v0  ;;  %v550_v3 = vpop.f32.mrb[15].mxu0  ;;  %v614_v4 = vpop.f32.mrb[15].mxu1  ;;  %v654_v5 = vmax.f32 %v546_v57, 0.0  ;;  %v670_v6 = vmax.f32 %v610_v58, 0.0 }
 0x126   : > { %v655_v7 = vmax.f32 %v549_v1, 0.0  ;;  %v671_v8 = vmax.f32 %v613_v2, 0.0 }
 0x128   : > { %v683_v9 = vmax.f32 %v654_v5, %v655_v7  ;;  %v715_v10 = vrot.slane %v655_v7, 7  ;;  %v691_v11 = vmax.f32 %v670_v6, %v671_v8  ;;  %v723_v12 = vrot.slane %v671_v8, 7 }
 0x129   : > { %v553_v13 = vpop.f32.mrb[16].mxu0  ;;  %v617_v14 = vpop.f32.mrb[16].mxu1 }
 0x12a   : > { %v748_v15 = vsel %vm744_vm1, 0.0, %v715_v10  ;;  %v756_v16 = vsel %vm744_vm1, 0.0, %v723_v12  ;;  %v554_v17 = vadd.f32 %v1303_v43, %v553_v13  ;;  %v618_v18 = vadd.f32 %v1303_v43, %v617_v14  ;;  %v555_v19 = vpop.f32.mrb[17].mxu0  ;;  %v619_v20 = vpop.f32.mrb[17].mxu1 }
 0x12b   : > { %v1346_v21 = vmax.f32 %v683_v9, %v748_v15  ;;  %v1348_v22 = vmax.f32 %v691_v11, %v756_v16  ;;  %v556_v23 = vpop.f32.mrb[18].mxu0  ;;  %v620_v24 = vpop.f32.mrb[18].mxu1 }
 0x12c   : > { %v557_v25 = vadd.f32 %v1303_v43, %v556_v23  ;;  %v621_v26 = vadd.f32 %v1303_v43, %v620_v24  ;;  %v558_v27 = vpop.f32.mrb[19].mxu0  ;;  %v622_v28 = vpop.f32.mrb[19].mxu1  ;;  %v656_v31 = vmax.f32 %v554_v17, 0.0  ;;  %v672_v34 = vmax.f32 %v618_v18, 0.0 }
 0x12d   : > { %v778_v29 = vmax.f32 %v763_v61, %v1346_v21  ;;  %v782_v30 = vmax.f32 %v771_v62, %v1348_v22 }
 0x12e   : > { %v657_v35 = vmax.f32 %v557_v25, 0.0  ;;  %v673_v36 = vmax.f32 %v621_v26, 0.0 }
 0x12f   : > { %v786_v37 = vmax.f32 %v778_v29, %v1320_v32  ;;  %v790_v38 = vmax.f32 %v782_v30, %v1322_v33 }
 0x130   : > { %v684_v39 = vmax.f32 %v656_v31, %v657_v35  ;;  %v716_v40 = vrot.slane %v657_v35, 7  ;;  %v692_v42 = vmax.f32 %v672_v34, %v673_v36  ;;  %v724_v44 = vrot.slane %v673_v36, 7 }
 0x131   : > { %v794_v45 = vpack.c.bf16 %v786_v37, %v786_v37  ;;  %v798_v46 = vpack.c.bf16 %v790_v38, %v790_v38  ;;  %v561_v47 = vpop.f32.mrb[20].mxu0  ;;  %v625_v48 = vpop.f32.mrb[20].mxu1 }
 0x132   : > { %v749_v49 = vsel %vm744_vm1, 0.0, %v716_v40  ;;  %v757_v50 = vsel %vm744_vm1, 0.0, %v724_v44  ;;  %v562_v51 = vadd.f32 %v1303_v43, %v561_v47  ;;  %v626_v32 = vadd.f32 %v1303_v43, %v625_v48  ;;  %v563_v52 = vpop.f32.mrb[21].mxu0  ;;  %v627_v53 = vpop.f32.mrb[21].mxu1 }
 0x133   : > { %803 = vst.msk [vmem:[%s1336_s8 + $0x4] sm:$0xf] %vm801_vm2, %v794_v45  ;;  %807 = vst.msk [vmem:[%s1336_s8 + $0x14] sm:$0xf] %vm801_vm2, %v798_v46  ;;  %v765_v33 = vmax.f32 %v684_v39, %v749_v49  ;;  %v773_v54 = vmax.f32 %v692_v42, %v757_v50  ;;  %v564_v55 = vpop.f32.mrb[22].mxu0  ;;  %v628_v56 = vpop.f32.mrb[22].mxu1 }
 0x134   : > { %v565_v57 = vadd.f32 %v1303_v43, %v564_v55  ;;  %v629_v58 = vadd.f32 %v1303_v43, %v628_v56  ;;  %v566_v59 = vpop.f32.mrb[23].mxu0  ;;  %v630_v60 = vpop.f32.mrb[23].mxu1  ;;  %v658_v61 = vmax.f32 %v562_v51, 0.0  ;;  %v674_v62 = vmax.f32 %v626_v32, 0.0 }
 0x136   : > { %v659_v63 = vmax.f32 %v565_v57, 0.0  ;;  %v675_v0 = vmax.f32 %v629_v58, 0.0 }
 0x138   : > { %v685_v1 = vmax.f32 %v658_v61, %v659_v63  ;;  %v717_v2 = vrot.slane %v659_v63, 7  ;;  %v693_v3 = vmax.f32 %v674_v62, %v675_v0  ;;  %v725_v4 = vrot.slane %v675_v0, 7 }
 0x139   : > { %v569_v5 = vpop.f32.mrb[24].mxu0  ;;  %v633_v6 = vpop.f32.mrb[24].mxu1 }
 0x13a   : > { %v750_v7 = vsel %vm744_vm1, 0.0, %v717_v2  ;;  %v758_v8 = vsel %vm744_vm1, 0.0, %v725_v4  ;;  %v570_v9 = vadd.f32 %v1303_v43, %v569_v5  ;;  %v634_v10 = vadd.f32 %v1303_v43, %v633_v6  ;;  %v571_v11 = vpop.f32.mrb[25].mxu0  ;;  %v635_v12 = vpop.f32.mrb[25].mxu1 }
 0x13b   : > { %v766_v13 = vmax.f32 %v685_v1, %v750_v7  ;;  %v774_v14 = vmax.f32 %v693_v3, %v758_v8  ;;  %v572_v15 = vpop.f32.mrb[26].mxu0  ;;  %v636_v16 = vpop.f32.mrb[26].mxu1 }
 0x13c   : > { %v573_v17 = vadd.f32 %v1303_v43, %v572_v15  ;;  %v637_v18 = vadd.f32 %v1303_v43, %v636_v16  ;;  %v574_v19 = vpop.f32.mrb[27].mxu0  ;;  %v638_v20 = vpop.f32.mrb[27].mxu1  ;;  %v660_v25 = vmax.f32 %v570_v9, 0.0  ;;  %v676_v26 = vmax.f32 %v634_v10, 0.0 }
 0x13d   : > { %v779_v23 = vmax.f32 %v765_v33, %v766_v13  ;;  %v783_v24 = vmax.f32 %v773_v54, %v774_v14 }
 0x13e   : > { %v661_v27 = vmax.f32 %v573_v17, 0.0  ;;  %v677_v28 = vmax.f32 %v637_v18, 0.0 }
 0x13f   : > { %v787_v29 = vmax.f32 %v779_v23, %v1346_v21  ;;  %v791_v30 = vmax.f32 %v783_v24, %v1348_v22 }
 0x140   : > { %v686_v31 = vmax.f32 %v660_v25, %v661_v27  ;;  %v718_v34 = vrot.slane %v661_v27, 7  ;;  %v694_v35 = vmax.f32 %v676_v26, %v677_v28  ;;  %v726_v36 = vrot.slane %v677_v28, 7 }
 0x141   : > { %v795_v37 = vpack.c.bf16 %v787_v29, %v787_v29  ;;  %v799_v38 = vpack.c.bf16 %v791_v30, %v791_v30  ;;  %v577_v39 = vpop.f32.mrb[28].mxu0  ;;  %v641_v40 = vpop.f32.mrb[28].mxu1 }
 0x142   : > { %v751_v42 = vsel %vm744_vm1, 0.0, %v718_v34  ;;  %v759_v44 = vsel %vm744_vm1, 0.0, %v726_v36  ;;  %v578_v45 = vadd.f32 %v1303_v43, %v577_v39  ;;  %v642_v21 = vadd.f32 %v1303_v43, %v641_v40  ;;  %v579_v46 = vpop.f32.mrb[29].mxu0  ;;  %v643_v47 = vpop.f32.mrb[29].mxu1 }
 0x143   : > { %804 = vst.msk [vmem:[%s1336_s8 + $0x8] sm:$0xf] %vm801_vm2, %v795_v37  ;;  %808 = vst.msk [vmem:[%s1336_s8 + $0x18] sm:$0xf] %vm801_vm2, %v799_v38  ;;  %v767_v22 = vmax.f32 %v686_v31, %v751_v42  ;;  %v775_v48 = vmax.f32 %v694_v35, %v759_v44  ;;  %v580_v49 = vpop.f32.mrb[30].mxu0  ;;  %v644_v50 = vpop.f32.mrb[30].mxu1 }
 0x144   : > { %v581_v51 = vadd.f32 %v1303_v43, %v580_v49  ;;  %v645_v32 = vadd.f32 %v1303_v43, %v644_v50  ;;  %v582_v52 = vpop.f32.mrb[31].mxu0  ;;  %v646_v53 = vpop.f32.mrb[31].mxu1  ;;  %v662_v33 = vmax.f32 %v578_v45, 0.0  ;;  %v678_v54 = vmax.f32 %v642_v21, 0.0 }
 0x146   : > { %v663_v55 = vmax.f32 %v581_v51, 0.0  ;;  %v679_v56 = vmax.f32 %v645_v32, 0.0 }
 0x148   : > { %v687_v57 = vmax.f32 %v662_v33, %v663_v55  ;;  %v719_v58 = vrot.slane %v663_v55, 7  ;;  %v695_v59 = vmax.f32 %v678_v54, %v679_v56  ;;  %v727_v60 = vrot.slane %v679_v56, 7 }
 0x14a   : > { %v752_v61 = vsel %vm744_vm1, 0.0, %v719_v58  ;;  %v760_v62 = vsel %vm744_vm1, 0.0, %v727_v60 }
 0x14b   : > { %v768_v63 = vmax.f32 %v687_v57, %v752_v61  ;;  %v776_v43 = vmax.f32 %v695_v59, %v760_v62 }
 0x14d   : > { %v780_v0 = vmax.f32 %v767_v22, %v768_v63  ;;  %v789_v1 = vmax.f32 %v1330_v41, %v768_v63  ;;  %v784_v2 = vmax.f32 %v775_v48, %v776_v43 }
 0x14f   : > { %v788_v3 = vmax.f32 %v780_v0, %v766_v13  ;;  %v797_v4 = vpack.c.bf16 %v789_v1, %v789_v1  ;;  %v792_v5 = vmax.f32 %v784_v2, %v774_v14 }
 0x151   : > { %v796_v6 = vpack.c.bf16 %v788_v3, %v788_v3  ;;  %806 = vst.msk [vmem:[%s1336_s8 + $0x10] sm:$0xf] %vm801_vm2, %v797_v4  ;;  %v800_v41 = vpack.c.bf16 %v792_v5, %v792_v5 }
 0x153   : > { %805 = vst.msk [vmem:[%s1336_s8 + $0xc] sm:$0xf] %vm801_vm2, %v796_v6  ;;  %809 = vst.msk [vmem:[%s1336_s8 + $0x1c] sm:$0xf] %vm801_vm2, %v800_v41 }
 0x154   : > { %1093 = shalt.err (!%p1090_p3)
}
 0x155   : > { %s1094_s27 = scalar_lea.hbm %s1392_s19, 512  ;;  %s1098_s30 = scalar_lea.hbm %s1448_s3, 1024 }
 0x156   : > { %p1095_p4 = scmp.ne.s32.totalorder %s1392_s19, %s1094_s27  ;;  %p1099_p9 = scmp.lt.u32.totalorder %s1392_s19, %s1448_s3 }
 0x157   : > { %p1100_p10 = scmp.lt.u32.totalorder %s1098_s30, %s1094_s27  ;;  %p1102_p12 = scmp.lt.u32.totalorder %s1094_s27, %s1392_s19 }
 0x158   : > { %p1096_p7 = pnand %p1095_p4, %p1206_p5 }
 0x159   : > { %p1101_p11 = por %p1100_p10, %p1099_p9 }
 0x15a   : > { %p1097_p8 = pneg %p1096_p7 }
 0x15b   : > { %p1103_p13 = por %p1102_p12, %p1101_p11 }
 0x15d   : > { %p1104_p0 = pnand %p1103_p13, %p1097_p8 }
 0x15f   : > { %1107 = shalt.err (!%p1104_p0)
}
 0x160   : > { %s1146_s6 = smov 64   ;;  %s1147_s7 = smov 4  }
 0x161   : > { %980 = dma.vmem_to_hbm [thread:$0]  (%p1206_p5), %s1394_s10, 512, %s1392_s19, %s1404_s16, %s1146_s6, %s1146_s6, %s1147_s7  }
 0x162 PF: > { %p986_p1 = scmp.ge.s32.totalorder %s1142_s15, 2  ;;  %s839_s8 = sand.u32 1, %s1130_s12  }
 0x163   : > { %s840_s9 = scalar_lea.sflag [#allocation3], %s839_s8 }
 0x164   : > { %p983_p2 = pnand %p986_p1, %p1210_p6 }
 0x166   : > { %1125 = dma.done.wait (!%p983_p2), %s840_s9, 512  }
 0x167   : > { %1127 = vsyncadd (!%p983_p2), %s840_s9, 4294966784  ;;  %p13_p3 = scmp.ge.s32.totalorder %s1193_s18, 4   ;;  %s1451_s12 = smov %s1134_s13 }
 0x168   : > { %s1452_s13 = smov %s1138_s14  ;;  %s1453_s14 = smov %s1204_s21 }
 0x169   : > { %s1454_s15 = smov %s1193_s18  ;;  %15 = sbr.rel (!%p13_p3) target bundleno = 3 (0x3), region = 67 }
 0x170   :  { %845 = vsyncpa [#allocation3], 1 }
 0x171   :  { %847 = vsyncpa [#allocation3 + $0x1], 1 }

</bundles_post_ra>
